<compile_context>
chip_gen: v6e
topology: v6e:2x2x1
jax: 0.10.0
libtpu: 0.0.40
codegen_flags: <defaults>
</compile_context>

<pallas_src>
import functools

import jax
import jax.numpy as jnp
from jax.experimental import pallas as pl


_SUBLANE = 8    # f32 sublane tile
_LANE = 128     # lane tile


# ----------------------------------------------------------------------------
# Pallas kernel: LSTM layer 0 (zero init state) + fc head, all in one invocation
# ----------------------------------------------------------------------------
def _lstm_fc_kernel(x_ref, wih_ref, whh_ref, b_ref, w1_ref, b1_ref, w2_ref, b2_ref, out_ref):
    TB, D = x_ref.shape            # TB = T * Bp, rows are time-major: row = t*Bp + b
    H = whh_ref.shape[0]
    Bp = out_ref.shape[0]
    T = TB // Bp

    # Hoisted input projection: every (t, b) row in ONE MXU matmul, bias folded in.
    gx = (
        jnp.dot(x_ref[...], wih_ref[...], preferred_element_type=jnp.float32) + b_ref[...]
    )                               # (T*Bp, 4H)

    whh = whh_ref[...]              # (H, 4H), resident in vregs across the whole recurrence

    h = jnp.zeros((Bp, H), jnp.float32)
    c = jnp.zeros((Bp, H), jnp.float32)

    # Recurrence: fully unrolled straight-line code; h/c live in vregs.
    # gx[t*Bp:(t+1)*Bp, :] is a whole-vreg, statically aligned sublane slice (Bp == 8).
    for t in range(T):
        gates = gx[t * Bp:(t + 1) * Bp, :] + jnp.dot(
            h, whh, preferred_element_type=jnp.float32
        )                           # (Bp, 4H), gate order i|f|g|o
        sig = jax.nn.sigmoid(gates)  # one EUP pass over the full slab
        tnh = jnp.tanh(gates)        # one EUP pass over the full slab
        i_g = sig[:, 0 * H:1 * H]
        f_g = sig[:, 1 * H:2 * H]
        g_g = tnh[:, 2 * H:3 * H]
        o_g = sig[:, 3 * H:4 * H]
        c = f_g * c + i_g * g_g
        h = o_g * jnp.tanh(c)

    # Fused FC head: ReLU -> Linear(H, 256) -> Linear(256, padded_classes). Lane-dense store.
    z = jnp.dot(jnp.maximum(h, 0.0), w1_ref[...], preferred_element_type=jnp.float32) + b1_ref[...]
    out_ref[...] = (
        jnp.dot(z, w2_ref[...], preferred_element_type=jnp.float32) + b2_ref[...]
    ).astype(out_ref.dtype)


# ----------------------------------------------------------------------------
# Wrapper
# ----------------------------------------------------------------------------
@functools.partial(jax.jit, static_argnames=("hidden", "num_classes"))
def lstm_model_forward(x, params, hidden, num_classes):
    """Forward of the PyTorch module: fc(h_T of LSTM layer 0). x: (B, T, D) batch-first."""
    B, T, D = x.shape
    Bp = max(_SUBLANE, ((B + _SUBLANE - 1) // _SUBLANE) * _SUBLANE)      # full sublane tile
    Cp = max(_LANE, ((num_classes + _LANE - 1) // _LANE) * _LANE)        # lane-dense logits

    # One-time few-KiB input prep, fused by XLA inside this jit: pad the batch to a sublane
    # tile and lay rows out time-major so per-step gate slabs are whole-vreg static slices.
    x_pad = jnp.zeros((Bp, T, D), jnp.float32).at[:B].set(x)
    x_rows = jnp.transpose(x_pad, (1, 0, 2)).reshape(T * Bp, D)          # row = t*Bp + b

    # Weights stored transposed so all kernel matmuls are plain row-major MXU dots.
    wih_t = jnp.transpose(params["w_ih"])                                # (D, 4H)
    whh_t = jnp.transpose(params["w_hh"])                                # (H, 4H)
    bias = (params["b_ih"] + params["b_hh"]).reshape(1, 4 * hidden)      # (1, 4H)
    w1_t = jnp.transpose(params["fc1_w"])                                # (H, 256)
    b1 = params["fc1_b"].reshape(1, -1)                                  # (1, 256)
    fc_mid = params["fc2_w"].shape[1]
    w2_t = jnp.zeros((fc_mid, Cp), jnp.float32).at[:, :num_classes].set(
        jnp.transpose(params["fc2_w"])
    )                                                                    # (256, Cp)
    b2 = jnp.zeros((1, Cp), jnp.float32).at[:, :num_classes].set(params["fc2_b"])

    logits_pad = pl.pallas_call(
        _lstm_fc_kernel,
        out_shape=jax.ShapeDtypeStruct((Bp, Cp), jnp.float32),
    )(x_rows, wih_t, whh_t, bias, w1_t, b1, w2_t, b2)

    return logits_pad[:B, :num_classes]


# ----------------------------------------------------------------------------
# Pure-JAX reference (for correctness check)
# ----------------------------------------------------------------------------
def reference_forward(x, params, hidden):
    B, T, D = x.shape
    w_ih, w_hh = params["w_ih"], params["w_hh"]
    bias = params["b_ih"] + params["b_hh"]

    def step(carry, x_t):
        h, c = carry
        gates = x_t @ w_ih.T + h @ w_hh.T + bias
        i = jax.nn.sigmoid(gates[:, 0 * hidden:1 * hidden])
        f = jax.nn.sigmoid(gates[:, 1 * hidden:2 * hidden])
        g = jnp.tanh(gates[:, 2 * hidden:3 * hidden])
        o = jax.nn.sigmoid(gates[:, 3 * hidden:4 * hidden])
        c = f * c + i * g
        h = o * jnp.tanh(c)
        return (h, c), None

    h0 = jnp.zeros((B, hidden), jnp.float32)
    c0 = jnp.zeros((B, hidden), jnp.float32)
    (h_final, _), _ = jax.lax.scan(step, (h0, c0), jnp.transpose(x, (1, 0, 2)))

    out = jnp.maximum(h_final, 0.0)
    out = out @ params["fc1_w"].T + params["fc1_b"]
    out = out @ params["fc2_w"].T + params["fc2_b"]
    return out


# ----------------------------------------------------------------------------
# Main
# ----------------------------------------------------------------------------
if __name__ == "__main__":
    # Small shapes consistent with the module's forward (hidden shrunk from 500 -> 32).
    B, T, D = 2, 8, 16          # batch, seq_len, input_size
    HIDDEN = 32
    NUM_CLASSES = 3
    FC_MID = 256

    key = jax.random.PRNGKey(0)
    keys = jax.random.split(key, 10)
    s_lstm = 1.0 / jnp.sqrt(HIDDEN)   # PyTorch nn.LSTM init scale
    params = {
        "w_ih": jax.random.uniform(keys[0], (4 * HIDDEN, D), jnp.float32, -s_lstm, s_lstm),
        "w_hh": jax.random.uniform(keys[1], (4 * HIDDEN, HIDDEN), jnp.float32, -s_lstm, s_lstm),
        "b_ih": jax.random.uniform(keys[2], (4 * HIDDEN,), jnp.float32, -s_lstm, s_lstm),
        "b_hh": jax.random.uniform(keys[3], (4 * HIDDEN,), jnp.float32, -s_lstm, s_lstm),
        "fc1_w": jax.random.uniform(keys[4], (FC_MID, HIDDEN), jnp.float32,
                                    -1.0 / jnp.sqrt(HIDDEN), 1.0 / jnp.sqrt(HIDDEN)),
        "fc1_b": jax.random.uniform(keys[5], (FC_MID,), jnp.float32,
                                    -1.0 / jnp.sqrt(HIDDEN), 1.0 / jnp.sqrt(HIDDEN)),
        "fc2_w": jax.random.uniform(keys[6], (NUM_CLASSES, FC_MID), jnp.float32,
                                    -1.0 / jnp.sqrt(FC_MID), 1.0 / jnp.sqrt(FC_MID)),
        "fc2_b": jax.random.uniform(keys[7], (NUM_CLASSES,), jnp.float32,
                                    -1.0 / jnp.sqrt(FC_MID), 1.0 / jnp.sqrt(FC_MID)),
    }

    x = jax.random.normal(keys[8], (B, T, D), jnp.float32)

    preds = jax.block_until_ready(lstm_model_forward(x, params, HIDDEN, NUM_CLASSES))
    ref = jax.block_until_ready(reference_forward(x, params, HIDDEN))

    assert preds.shape == (B, NUM_CLASSES)
    assert jnp.allclose(preds, ref, atol=1e-5, rtol=1e-5), (preds, ref)
    print("KERNEL_OK")
</pallas_src>

<mosaic_0001>
module attributes {stable_mosaic.version = 11 : i64} {
  func.func @_lstm_fc_kernel(%arg0: memref<64x16xf32, #tpu.memory_space<vmem>>, %arg1: memref<16x128xf32, #tpu.memory_space<vmem>>, %arg2: memref<32x128xf32, #tpu.memory_space<vmem>>, %arg3: memref<1x128xf32, #tpu.memory_space<vmem>>, %arg4: memref<32x256xf32, #tpu.memory_space<vmem>>, %arg5: memref<1x256xf32, #tpu.memory_space<vmem>>, %arg6: memref<256x128xf32, #tpu.memory_space<vmem>>, %arg7: memref<1x128xf32, #tpu.memory_space<vmem>>, %arg8: memref<8x128xf32, #tpu.memory_space<vmem>>) attributes {dimension_semantics = [], scalar_prefetch = 0 : i64, scratch_operands = 0 : i64, tpu.core_type = #tpu.core_type<tc>} {
    %c0 = arith.constant 0 : index
    %c0_0 = arith.constant 0 : index
    %0 = vector.load %arg0[%c0, %c0_0] : memref<64x16xf32, #tpu.memory_space<vmem>>, vector<64x16xf32>
    %c0_1 = arith.constant 0 : index
    %c0_2 = arith.constant 0 : index
    %1 = vector.load %arg1[%c0_1, %c0_2] : memref<16x128xf32, #tpu.memory_space<vmem>>, vector<16x128xf32>
    %cst = arith.constant dense<0.000000e+00> : vector<64x128xf32>
    %2 = tpu.matmul %0, %1, %cst {dimension_numbers = #tpu.dot_dimension_numbers<[1], [0], [0], [1], [0, 0, 1, 1], [], []>} : vector<64x16xf32>, vector<16x128xf32>, vector<64x128xf32> -> vector<64x128xf32>
    %c0_3 = arith.constant 0 : index
    %c0_4 = arith.constant 0 : index
    %3 = vector.load %arg3[%c0_3, %c0_4] : memref<1x128xf32, #tpu.memory_space<vmem>>, vector<1x128xf32>
    %4 = vector.broadcast %3 : vector<1x128xf32> to vector<64x128xf32>
    %5 = arith.addf %2, %4 : vector<64x128xf32>
    %c0_5 = arith.constant 0 : index
    %c0_6 = arith.constant 0 : index
    %6 = vector.load %arg2[%c0_5, %c0_6] : memref<32x128xf32, #tpu.memory_space<vmem>>, vector<32x128xf32>
    %cst_7 = arith.constant 0.000000e+00 : f32
    %7 = vector.broadcast %cst_7 : f32 to vector<8x32xf32>
    %cst_8 = arith.constant 0.000000e+00 : f32
    %8 = vector.broadcast %cst_8 : f32 to vector<8x32xf32>
    %9 = vector.extract_strided_slice %5 {offsets = [0, 0], sizes = [8, 128], strides = [1, 1]} : vector<64x128xf32> to vector<8x128xf32>
    %cst_9 = arith.constant dense<0.000000e+00> : vector<8x128xf32>
    %10 = tpu.matmul %7, %6, %cst_9 {dimension_numbers = #tpu.dot_dimension_numbers<[1], [0], [0], [1], [0, 0, 1, 1], [], []>} : vector<8x32xf32>, vector<32x128xf32>, vector<8x128xf32> -> vector<8x128xf32>
    %11 = arith.addf %9, %10 : vector<8x128xf32>
    %12 = arith.negf %11 : vector<8x128xf32>
    %13 = math.exp %12 : vector<8x128xf32>
    %cst_10 = arith.constant 1.000000e+00 : f32
    %14 = vector.broadcast %cst_10 : f32 to vector<8x128xf32>
    %15 = arith.addf %14, %13 : vector<8x128xf32>
    %16 = arith.divf %14, %15 : vector<8x128xf32>
    %17 = math.tanh %11 : vector<8x128xf32>
    %18 = vector.extract_strided_slice %16 {offsets = [0, 0], sizes = [8, 32], strides = [1, 1]} : vector<8x128xf32> to vector<8x32xf32>
    %19 = vector.extract_strided_slice %16 {offsets = [0, 32], sizes = [8, 32], strides = [1, 1]} : vector<8x128xf32> to vector<8x32xf32>
    %20 = vector.extract_strided_slice %17 {offsets = [0, 64], sizes = [8, 32], strides = [1, 1]} : vector<8x128xf32> to vector<8x32xf32>
    %21 = vector.extract_strided_slice %16 {offsets = [0, 96], sizes = [8, 32], strides = [1, 1]} : vector<8x128xf32> to vector<8x32xf32>
    %22 = arith.mulf %19, %8 : vector<8x32xf32>
    %23 = arith.mulf %18, %20 : vector<8x32xf32>
    %24 = arith.addf %22, %23 : vector<8x32xf32>
    %25 = math.tanh %24 : vector<8x32xf32>
    %26 = arith.mulf %21, %25 : vector<8x32xf32>
    %27 = vector.extract_strided_slice %5 {offsets = [8, 0], sizes = [8, 128], strides = [1, 1]} : vector<64x128xf32> to vector<8x128xf32>
    %cst_11 = arith.constant dense<0.000000e+00> : vector<8x128xf32>
    %28 = tpu.matmul %26, %6, %cst_11 {dimension_numbers = #tpu.dot_dimension_numbers<[1], [0], [0], [1], [0, 0, 1, 1], [], []>} : vector<8x32xf32>, vector<32x128xf32>, vector<8x128xf32> -> vector<8x128xf32>
    %29 = arith.addf %27, %28 : vector<8x128xf32>
    %30 = arith.negf %29 : vector<8x128xf32>
    %31 = math.exp %30 : vector<8x128xf32>
    %cst_12 = arith.constant 1.000000e+00 : f32
    %32 = vector.broadcast %cst_12 : f32 to vector<8x128xf32>
    %33 = arith.addf %32, %31 : vector<8x128xf32>
    %34 = arith.divf %32, %33 : vector<8x128xf32>
    %35 = math.tanh %29 : vector<8x128xf32>
    %36 = vector.extract_strided_slice %34 {offsets = [0, 0], sizes = [8, 32], strides = [1, 1]} : vector<8x128xf32> to vector<8x32xf32>
    %37 = vector.extract_strided_slice %34 {offsets = [0, 32], sizes = [8, 32], strides = [1, 1]} : vector<8x128xf32> to vector<8x32xf32>
    %38 = vector.extract_strided_slice %35 {offsets = [0, 64], sizes = [8, 32], strides = [1, 1]} : vector<8x128xf32> to vector<8x32xf32>
    %39 = vector.extract_strided_slice %34 {offsets = [0, 96], sizes = [8, 32], strides = [1, 1]} : vector<8x128xf32> to vector<8x32xf32>
    %40 = arith.mulf %37, %24 : vector<8x32xf32>
    %41 = arith.mulf %36, %38 : vector<8x32xf32>
    %42 = arith.addf %40, %41 : vector<8x32xf32>
    %43 = math.tanh %42 : vector<8x32xf32>
    %44 = arith.mulf %39, %43 : vector<8x32xf32>
    %45 = vector.extract_strided_slice %5 {offsets = [16, 0], sizes = [8, 128], strides = [1, 1]} : vector<64x128xf32> to vector<8x128xf32>
    %cst_13 = arith.constant dense<0.000000e+00> : vector<8x128xf32>
    %46 = tpu.matmul %44, %6, %cst_13 {dimension_numbers = #tpu.dot_dimension_numbers<[1], [0], [0], [1], [0, 0, 1, 1], [], []>} : vector<8x32xf32>, vector<32x128xf32>, vector<8x128xf32> -> vector<8x128xf32>
    %47 = arith.addf %45, %46 : vector<8x128xf32>
    %48 = arith.negf %47 : vector<8x128xf32>
    %49 = math.exp %48 : vector<8x128xf32>
    %cst_14 = arith.constant 1.000000e+00 : f32
    %50 = vector.broadcast %cst_14 : f32 to vector<8x128xf32>
    %51 = arith.addf %50, %49 : vector<8x128xf32>
    %52 = arith.divf %50, %51 : vector<8x128xf32>
    %53 = math.tanh %47 : vector<8x128xf32>
    %54 = vector.extract_strided_slice %52 {offsets = [0, 0], sizes = [8, 32], strides = [1, 1]} : vector<8x128xf32> to vector<8x32xf32>
    %55 = vector.extract_strided_slice %52 {offsets = [0, 32], sizes = [8, 32], strides = [1, 1]} : vector<8x128xf32> to vector<8x32xf32>
    %56 = vector.extract_strided_slice %53 {offsets = [0, 64], sizes = [8, 32], strides = [1, 1]} : vector<8x128xf32> to vector<8x32xf32>
    %57 = vector.extract_strided_slice %52 {offsets = [0, 96], sizes = [8, 32], strides = [1, 1]} : vector<8x128xf32> to vector<8x32xf32>
    %58 = arith.mulf %55, %42 : vector<8x32xf32>
    %59 = arith.mulf %54, %56 : vector<8x32xf32>
    %60 = arith.addf %58, %59 : vector<8x32xf32>
    %61 = math.tanh %60 : vector<8x32xf32>
    %62 = arith.mulf %57, %61 : vector<8x32xf32>
    %63 = vector.extract_strided_slice %5 {offsets = [24, 0], sizes = [8, 128], strides = [1, 1]} : vector<64x128xf32> to vector<8x128xf32>
    %cst_15 = arith.constant dense<0.000000e+00> : vector<8x128xf32>
    %64 = tpu.matmul %62, %6, %cst_15 {dimension_numbers = #tpu.dot_dimension_numbers<[1], [0], [0], [1], [0, 0, 1, 1], [], []>} : vector<8x32xf32>, vector<32x128xf32>, vector<8x128xf32> -> vector<8x128xf32>
    %65 = arith.addf %63, %64 : vector<8x128xf32>
    %66 = arith.negf %65 : vector<8x128xf32>
    %67 = math.exp %66 : vector<8x128xf32>
    %cst_16 = arith.constant 1.000000e+00 : f32
    %68 = vector.broadcast %cst_16 : f32 to vector<8x128xf32>
    %69 = arith.addf %68, %67 : vector<8x128xf32>
    %70 = arith.divf %68, %69 : vector<8x128xf32>
    %71 = math.tanh %65 : vector<8x128xf32>
    %72 = vector.extract_strided_slice %70 {offsets = [0, 0], sizes = [8, 32], strides = [1, 1]} : vector<8x128xf32> to vector<8x32xf32>
    %73 = vector.extract_strided_slice %70 {offsets = [0, 32], sizes = [8, 32], strides = [1, 1]} : vector<8x128xf32> to vector<8x32xf32>
    %74 = vector.extract_strided_slice %71 {offsets = [0, 64], sizes = [8, 32], strides = [1, 1]} : vector<8x128xf32> to vector<8x32xf32>
    %75 = vector.extract_strided_slice %70 {offsets = [0, 96], sizes = [8, 32], strides = [1, 1]} : vector<8x128xf32> to vector<8x32xf32>
    %76 = arith.mulf %73, %60 : vector<8x32xf32>
    %77 = arith.mulf %72, %74 : vector<8x32xf32>
    %78 = arith.addf %76, %77 : vector<8x32xf32>
    %79 = math.tanh %78 : vector<8x32xf32>
    %80 = arith.mulf %75, %79 : vector<8x32xf32>
    %81 = vector.extract_strided_slice %5 {offsets = [32, 0], sizes = [8, 128], strides = [1, 1]} : vector<64x128xf32> to vector<8x128xf32>
    %cst_17 = arith.constant dense<0.000000e+00> : vector<8x128xf32>
    %82 = tpu.matmul %80, %6, %cst_17 {dimension_numbers = #tpu.dot_dimension_numbers<[1], [0], [0], [1], [0, 0, 1, 1], [], []>} : vector<8x32xf32>, vector<32x128xf32>, vector<8x128xf32> -> vector<8x128xf32>
    %83 = arith.addf %81, %82 : vector<8x128xf32>
    %84 = arith.negf %83 : vector<8x128xf32>
    %85 = math.exp %84 : vector<8x128xf32>
    %cst_18 = arith.constant 1.000000e+00 : f32
    %86 = vector.broadcast %cst_18 : f32 to vector<8x128xf32>
    %87 = arith.addf %86, %85 : vector<8x128xf32>
    %88 = arith.divf %86, %87 : vector<8x128xf32>
    %89 = math.tanh %83 : vector<8x128xf32>
    %90 = vector.extract_strided_slice %88 {offsets = [0, 0], sizes = [8, 32], strides = [1, 1]} : vector<8x128xf32> to vector<8x32xf32>
    %91 = vector.extract_strided_slice %88 {offsets = [0, 32], sizes = [8, 32], strides = [1, 1]} : vector<8x128xf32> to vector<8x32xf32>
    %92 = vector.extract_strided_slice %89 {offsets = [0, 64], sizes = [8, 32], strides = [1, 1]} : vector<8x128xf32> to vector<8x32xf32>
    %93 = vector.extract_strided_slice %88 {offsets = [0, 96], sizes = [8, 32], strides = [1, 1]} : vector<8x128xf32> to vector<8x32xf32>
    %94 = arith.mulf %91, %78 : vector<8x32xf32>
    %95 = arith.mulf %90, %92 : vector<8x32xf32>
    %96 = arith.addf %94, %95 : vector<8x32xf32>
    %97 = math.tanh %96 : vector<8x32xf32>
    %98 = arith.mulf %93, %97 : vector<8x32xf32>
    %99 = vector.extract_strided_slice %5 {offsets = [40, 0], sizes = [8, 128], strides = [1, 1]} : vector<64x128xf32> to vector<8x128xf32>
    %cst_19 = arith.constant dense<0.000000e+00> : vector<8x128xf32>
    %100 = tpu.matmul %98, %6, %cst_19 {dimension_numbers = #tpu.dot_dimension_numbers<[1], [0], [0], [1], [0, 0, 1, 1], [], []>} : vector<8x32xf32>, vector<32x128xf32>, vector<8x128xf32> -> vector<8x128xf32>
    %101 = arith.addf %99, %100 : vector<8x128xf32>
    %102 = arith.negf %101 : vector<8x128xf32>
    %103 = math.exp %102 : vector<8x128xf32>
    %cst_20 = arith.constant 1.000000e+00 : f32
    %104 = vector.broadcast %cst_20 : f32 to vector<8x128xf32>
    %105 = arith.addf %104, %103 : vector<8x128xf32>
    %106 = arith.divf %104, %105 : vector<8x128xf32>
    %107 = math.tanh %101 : vector<8x128xf32>
    %108 = vector.extract_strided_slice %106 {offsets = [0, 0], sizes = [8, 32], strides = [1, 1]} : vector<8x128xf32> to vector<8x32xf32>
    %109 = vector.extract_strided_slice %106 {offsets = [0, 32], sizes = [8, 32], strides = [1, 1]} : vector<8x128xf32> to vector<8x32xf32>
    %110 = vector.extract_strided_slice %107 {offsets = [0, 64], sizes = [8, 32], strides = [1, 1]} : vector<8x128xf32> to vector<8x32xf32>
    %111 = vector.extract_strided_slice %106 {offsets = [0, 96], sizes = [8, 32], strides = [1, 1]} : vector<8x128xf32> to vector<8x32xf32>
    %112 = arith.mulf %109, %96 : vector<8x32xf32>
    %113 = arith.mulf %108, %110 : vector<8x32xf32>
    %114 = arith.addf %112, %113 : vector<8x32xf32>
    %115 = math.tanh %114 : vector<8x32xf32>
    %116 = arith.mulf %111, %115 : vector<8x32xf32>
    %117 = vector.extract_strided_slice %5 {offsets = [48, 0], sizes = [8, 128], strides = [1, 1]} : vector<64x128xf32> to vector<8x128xf32>
    %cst_21 = arith.constant dense<0.000000e+00> : vector<8x128xf32>
    %118 = tpu.matmul %116, %6, %cst_21 {dimension_numbers = #tpu.dot_dimension_numbers<[1], [0], [0], [1], [0, 0, 1, 1], [], []>} : vector<8x32xf32>, vector<32x128xf32>, vector<8x128xf32> -> vector<8x128xf32>
    %119 = arith.addf %117, %118 : vector<8x128xf32>
    %120 = arith.negf %119 : vector<8x128xf32>
    %121 = math.exp %120 : vector<8x128xf32>
    %cst_22 = arith.constant 1.000000e+00 : f32
    %122 = vector.broadcast %cst_22 : f32 to vector<8x128xf32>
    %123 = arith.addf %122, %121 : vector<8x128xf32>
    %124 = arith.divf %122, %123 : vector<8x128xf32>
    %125 = math.tanh %119 : vector<8x128xf32>
    %126 = vector.extract_strided_slice %124 {offsets = [0, 0], sizes = [8, 32], strides = [1, 1]} : vector<8x128xf32> to vector<8x32xf32>
    %127 = vector.extract_strided_slice %124 {offsets = [0, 32], sizes = [8, 32], strides = [1, 1]} : vector<8x128xf32> to vector<8x32xf32>
    %128 = vector.extract_strided_slice %125 {offsets = [0, 64], sizes = [8, 32], strides = [1, 1]} : vector<8x128xf32> to vector<8x32xf32>
    %129 = vector.extract_strided_slice %124 {offsets = [0, 96], sizes = [8, 32], strides = [1, 1]} : vector<8x128xf32> to vector<8x32xf32>
    %130 = arith.mulf %127, %114 : vector<8x32xf32>
    %131 = arith.mulf %126, %128 : vector<8x32xf32>
    %132 = arith.addf %130, %131 : vector<8x32xf32>
    %133 = math.tanh %132 : vector<8x32xf32>
    %134 = arith.mulf %129, %133 : vector<8x32xf32>
    %135 = vector.extract_strided_slice %5 {offsets = [56, 0], sizes = [8, 128], strides = [1, 1]} : vector<64x128xf32> to vector<8x128xf32>
    %cst_23 = arith.constant dense<0.000000e+00> : vector<8x128xf32>
    %136 = tpu.matmul %134, %6, %cst_23 {dimension_numbers = #tpu.dot_dimension_numbers<[1], [0], [0], [1], [0, 0, 1, 1], [], []>} : vector<8x32xf32>, vector<32x128xf32>, vector<8x128xf32> -> vector<8x128xf32>
    %137 = arith.addf %135, %136 : vector<8x128xf32>
    %138 = arith.negf %137 : vector<8x128xf32>
    %139 = math.exp %138 : vector<8x128xf32>
    %cst_24 = arith.constant 1.000000e+00 : f32
    %140 = vector.broadcast %cst_24 : f32 to vector<8x128xf32>
    %141 = arith.addf %140, %139 : vector<8x128xf32>
    %142 = arith.divf %140, %141 : vector<8x128xf32>
    %143 = math.tanh %137 : vector<8x128xf32>
    %144 = vector.extract_strided_slice %142 {offsets = [0, 0], sizes = [8, 32], strides = [1, 1]} : vector<8x128xf32> to vector<8x32xf32>
    %145 = vector.extract_strided_slice %142 {offsets = [0, 32], sizes = [8, 32], strides = [1, 1]} : vector<8x128xf32> to vector<8x32xf32>
    %146 = vector.extract_strided_slice %143 {offsets = [0, 64], sizes = [8, 32], strides = [1, 1]} : vector<8x128xf32> to vector<8x32xf32>
    %147 = vector.extract_strided_slice %142 {offsets = [0, 96], sizes = [8, 32], strides = [1, 1]} : vector<8x128xf32> to vector<8x32xf32>
    %148 = arith.mulf %145, %132 : vector<8x32xf32>
    %149 = arith.mulf %144, %146 : vector<8x32xf32>
    %150 = arith.addf %148, %149 : vector<8x32xf32>
    %151 = math.tanh %150 : vector<8x32xf32>
    %152 = arith.mulf %147, %151 : vector<8x32xf32>
    %cst_25 = arith.constant 0.000000e+00 : f32
    %153 = vector.broadcast %cst_25 : f32 to vector<8x32xf32>
    %154 = arith.maximumf %152, %153 : vector<8x32xf32>
    %c0_26 = arith.constant 0 : index
    %c0_27 = arith.constant 0 : index
    %155 = vector.load %arg4[%c0_26, %c0_27] : memref<32x256xf32, #tpu.memory_space<vmem>>, vector<32x256xf32>
    %cst_28 = arith.constant dense<0.000000e+00> : vector<8x256xf32>
    %156 = tpu.matmul %154, %155, %cst_28 {dimension_numbers = #tpu.dot_dimension_numbers<[1], [0], [0], [1], [0, 0, 1, 1], [], []>} : vector<8x32xf32>, vector<32x256xf32>, vector<8x256xf32> -> vector<8x256xf32>
    %c0_29 = arith.constant 0 : index
    %c0_30 = arith.constant 0 : index
    %157 = vector.load %arg5[%c0_29, %c0_30] : memref<1x256xf32, #tpu.memory_space<vmem>>, vector<1x256xf32>
    %158 = vector.broadcast %157 : vector<1x256xf32> to vector<8x256xf32>
    %159 = arith.addf %156, %158 : vector<8x256xf32>
    %c0_31 = arith.constant 0 : index
    %c0_32 = arith.constant 0 : index
    %160 = vector.load %arg6[%c0_31, %c0_32] : memref<256x128xf32, #tpu.memory_space<vmem>>, vector<256x128xf32>
    %cst_33 = arith.constant dense<0.000000e+00> : vector<8x128xf32>
    %161 = tpu.matmul %159, %160, %cst_33 {dimension_numbers = #tpu.dot_dimension_numbers<[1], [0], [0], [1], [0, 0, 1, 1], [], []>} : vector<8x256xf32>, vector<256x128xf32>, vector<8x128xf32> -> vector<8x128xf32>
    %c0_34 = arith.constant 0 : index
    %c0_35 = arith.constant 0 : index
    %162 = vector.load %arg7[%c0_34, %c0_35] : memref<1x128xf32, #tpu.memory_space<vmem>>, vector<1x128xf32>
    %163 = vector.broadcast %162 : vector<1x128xf32> to vector<8x128xf32>
    %164 = arith.addf %161, %163 : vector<8x128xf32>
    %c0_36 = arith.constant 0 : index
    %c0_37 = arith.constant 0 : index
    %165 = vector.load %arg8[%c0_36, %c0_37] : memref<8x128xf32, #tpu.memory_space<vmem>>, vector<8x128xf32>
    tpu.vector_store %arg8[%c0_36, %c0_37], %164 {strides = array<i32>} : memref<8x128xf32, #tpu.memory_space<vmem>>, vector<8x128xf32>,
    return
  }
}

</mosaic_0001>

<bundles_post_ra>
// kernel: lstm_model_forward.1
= control target key start
LH: loop header
LB: loop body
LE: loop exit
PB: predicated region body
PF: predicated region fallthrough
CT: control target
= control target key end

     0   :  { %vm46_vm0 = vcmask 130048   ;;  %v1473_v3 = vmov 0.0   ;;  %vm1474_vm1 = vmmov 0   ;;  %s1476_s10 = smov 32   ;;  %vm180_vm2 = vcmask 261120   ;;  %s1852_s1 = inlined_call_operand.vmem [shape: f32[16,128], index: 1, kind: input, shape index: {}]   ;;  %s1853_s0 = inlined_call_operand.vmem [shape: f32[64,16], index: 0, kind: input, shape index: {}]   ;;  %s1854_s2 = inlined_call_operand.vmem [shape: f32[32,128], index: 2, kind: input, shape index: {}]   ;;  %s1855_s3 = inlined_call_operand.vmem [shape: f32[1,128], index: 3, kind: input, shape index: {}]   ;;  %s1856_s4 = inlined_call_operand.vmem [shape: f32[32,256], index: 4, kind: input, shape index: {}]   ;;  %s1857_s6 = inlined_call_operand.vmem [shape: f32[256,128], index: 6, kind: input, shape index: {}]   ;;  %s1858_s5 = inlined_call_operand.vmem [shape: f32[1,256], index: 5, kind: input, shape index: {}]   ;;  %s1859_s7 = inlined_call_operand.vmem [shape: f32[1,128], index: 7, kind: input, shape index: {}]   ;;  %s1860_s8 = inlined_call_operand.vmem [shape: f32[8,128], index: 8, kind: output, shape index: {}]  }
   0x1   :  { %v38_v0 = vld [vmem:[%s1852_s1 + $0x8] sm:$0xff]  ;;  %v37_v1 = vld [vmem:[%s1852_s1] sm:$0xff]  ;;  %1350 = vmatprep.subr.mxu1 %v1473_v3  ;;  %1358 = vmatprep.mubr.msk.f32.mxu1 %vm1474_vm1, %v1473_v3  ;;  %v1538_v4 = vld [vmem:[%s1854_s2 + $0x18] sm:$0xff] }
   0x2   :  { %v29_v2 = vld [vmem:[%s1853_s0] sm:$0xff]  ;;  %1301 = vmatprep.subr.mxu0 %v38_v0  ;;  %v30_v5 = vld [vmem:[%s1853_s0 + $0x8] sm:$0xff]  ;;  %1351 = vmatpush3.msra.mxu1 %v1538_v4  ;;  %v31_v6 = vld [vmem:[%s1853_s0 + $0x10] sm:$0xff] }
   0x3   :  { %1305 = vmatprep.mubr.msk.f32.mxu0 %vm46_vm0, %v29_v2  ;;  %1302 = vmatpush3.msra.mxu0 %v38_v0  ;;  %v1550_v7 = vld [vmem:[%s1854_s2 + $0x10] sm:$0xff]  ;;  %v32_v8 = vld [vmem:[%s1853_s0 + $0x18] sm:$0xff]  ;;  %v33_v9 = vld [vmem:[%s1853_s0 + $0x20] sm:$0xff] }
   0x4   :  { %1303 = vmatprep.subr.mxu0 %v37_v1  ;;  %1352 = vmatprep.subr.mxu1 %v1473_v3  ;;  %v1568_v10 = vld [vmem:[%s1854_s2 + $0x8] sm:$0xff]  ;;  %v1578_v11 = vld [vmem:[%s1854_s2] sm:$0xff]  ;;  %v35_v13 = vld [vmem:[%s1853_s0 + $0x30] sm:$0xff] }
   0x5   :  { %1304 = vmatpush3.msra.mxu0 %v37_v1  ;;  %1353 = vmatpush3.msra.mxu1 %v1550_v7  ;;  %v34_v12 = vld [vmem:[%s1853_s0 + $0x28] sm:$0xff]  ;;  %v36_v14 = vld [vmem:[%s1853_s0 + $0x38] sm:$0xff]  ;;  %v1190_v15 = vld [vmem:[%s1855_s3] ss:$0 sm:$0xff]  ;;  %s1475_s3 = smov 64  }
   0x6   :  { %1306 = vmatmul.mubr.msk.f32.vlgmr.msra.gmra.mxu0 %vm46_vm0, %v30_v5  ;;  %1317 = vmatprep.subr.mxu0 %v1473_v3 }
   0x7   :  { %1318 = vmatpush3.msra.mxu0 %v1538_v4  ;;  %1308 = vmatprep.mubr.msk.f32.mxu0 %vm46_vm0, %v31_v6 }
   0x8   :  { %1319 = vmatprep.subr.mxu0 %v1473_v3  ;;  %1354 = vmatprep.subr.mxu1 %v1473_v3 }
   0x9   :  { %1320 = vmatpush3.msra.mxu0 %v1550_v7  ;;  %1355 = vmatpush3.msra.mxu1 %v1568_v10 }
   0xa   :  { %1309 = vmatmul.mubr.msk.f32.gmra.mxu0 %vm46_vm0, %v32_v8  ;;  %1321 = vmatprep.subr.mxu0 %v1473_v3 }
   0xb   :  { %1311 = vmatprep.mubr.msk.f32.mxu0 %vm46_vm0, %v33_v9  ;;  %1322 = vmatpush3.msra.mxu0 %v1568_v10 }
   0xc   :  { %1323 = vmatprep.subr.mxu0 %v1473_v3  ;;  %1356 = vmatprep.subr.mxu1 %v1473_v3 }
   0xd   :  { %1324 = vmatpush3.msra.mxu0 %v1578_v11  ;;  %1357 = vmatpush3.msra.mxu1 %v1578_v11 }
   0xe   :  { %1312 = vmatmul.mubr.msk.f32.gmra.mxu0 %vm46_vm0, %v34_v12  ;;  %1328 = vmatprep.subr.mxu0 %v1473_v3 }
   0xf   :  { %1314 = vmatprep.mubr.msk.f32.mxu0 %vm46_vm0, %v35_v13  ;;  %1372 = vmatprep.subr.mxu1 %v1473_v3 }
  0x12   :  { %1315 = vmatmul.mubr.msk.f32.gmra.mxu0 %vm46_vm0, %v36_v14 }
  0x13   :  { %1325 = vmatprep.mubr.msk.f32.mxu0 %vm1474_vm1, %v1473_v3 }
  0x16   :  { %1326 = vmatmul.mubr.f32.vlgmr.msra.gmra.mxu0 %v1473_v3 }
  0x17   :  { %1329 = vmatpush3.msra.mxu0 %v1538_v4  ;;  %1336 = vmatprep.mubr.msk.f32.mxu0 %vm1474_vm1, %v1473_v3 }
  0x18   :  { %1330 = vmatprep.subr.mxu0 %v1473_v3 }
  0x19   :  { %1331 = vmatpush3.msra.mxu0 %v1550_v7 }
  0x1a   :  { %1332 = vmatprep.subr.mxu0 %v1473_v3 }
  0x1b   :  { %1333 = vmatpush3.msra.mxu0 %v1568_v10 }
  0x1c   :  { %1334 = vmatprep.subr.mxu0 %v1473_v3 }
  0x1d   :  { %1335 = vmatpush3.msra.mxu0 %v1578_v11 }
  0x1e   :  { %1339 = vmatprep.subr.mxu0 %v1473_v3 }
  0xc6   :  { %v1307_v16 = vpop.f32.mrf.mxu0 }
  0xc7   :  { %v143_v17 = vadd.f32 %v1307_v16, %v1190_v15 }
  0xc8   :  { %v137_v18 = vpop.f32.mrf.mxu0 }
  0xc9   :  { %v138_v30 = vadd.f32 %v1190_v15, %v137_v18 }
  0xca   :  { %v1310_v19 = vpop.f32.mrf.mxu0 }
  0xcb   :  { %v1616_v20 = vadd.f32 %v1310_v19, %v1190_v15 }
  0xcc   :  { %v147_v21 = vpop.f32.mrf.mxu0 }
  0xcd   :  { %v1618_v22 = vadd.f32 %v1190_v15, %v147_v21 }
  0xce   :  { %v1313_v23 = vpop.f32.mrf.mxu0 }
  0xcf   :  { %v1620_v24 = vadd.f32 %v1313_v23, %v1190_v15 }
  0xd0   :  { %v157_v25 = vpop.f32.mrf.mxu0 }
  0xd1   :  { %v1622_v26 = vadd.f32 %v1190_v15, %v157_v25 }
  0xd2   :  { %v1316_v27 = vpop.f32.mrf.mxu0 }
  0xd3   :  { %v1624_v28 = vadd.f32 %v1316_v27, %v1190_v15 }
  0xd4   :  { %v167_v29 = vpop.f32.mrf.mxu0 }
  0xd5   :  { %v1626_v31 = vadd.f32 %v1190_v15, %v167_v29 }
  0xd6   :  { %v250_v32 = vpop.f32.mrf.mxu0 }
  0xd7   :  { %v254_v33 = vadd.f32 %v250_v32, %v138_v30 }
  0xd8   :  { %v1327_v34 = vpop.f32.mrf.mxu0 }
  0xd9   :  { %1409 = vtanh.f32 %v254_v33  ;;  %v1199_v36 = vmul.f32 -1.442695, %v254_v33 }
  0xdb   :  { %1411 = vpow2.f32 %v1199_v36 }
  0xe6   :  { %v1410_v35 = vpop.eup %1409 }
  0xe7   :  { %264 = vrot.lane.b32.xlu0 %v1410_v35, %s1475_s3 }
  0xe8   :  { %v1412_v37 = vpop.eup %1411 }
  0xe9   :  { %v258_v38 = vadd.f32 1.0, %v1412_v37 }
  0xeb   :  { %1413 = vrcp.f32 %v258_v38 }
  0xf8   :  { %v1414_v39 = vpop.eup %1413 }
  0xf9   :  { %v262_v42 = vmul.f32 0.0, %v1414_v39 }
 0x159   :  { %v265_v40 = vpop.permute.xlu0 %264 }
 0x15a   :  { %v267_v41 = vmul.f32 %v1414_v39, %v265_v40 }
 0x15c   :  { %269 = vrot.lane.b32.xlu0 %v267_v41, %s1476_s10 }
 0x1ce   :  { %v270_v43 = vpop.permute.xlu0 %269 }
 0x1cf   :  { %v272_v44 = vadd.f32 %v270_v43, %v262_v42 }
 0x1d1   :  { %1415 = vtanh.f32 %v272_v44 }
 0x1de   :  { %v1416_v45 = vpop.eup %1415 }
 0x1df   :  { %275 = vrot.lane.b32.xlu1 %v1416_v45, %s1475_s3 }
 0x251   :  { %v276_v46 = vpop.permute.xlu1 %275 }
 0x252   :  { %v278_v47 = vmul.f32 %v1414_v39, %v276_v46 }
 0x254   :  { %280 = vrot.lane.b32.xlu1 %v278_v47, %s1476_s10 }
 0x2c6   :  { %v281_v48 = vpop.permute.xlu1 %280 }
 0x2c7   :  { %1337 = vmatmul.mubr.msk.f32.vlgmr.msra.gmra.mxu0 %vm180_vm2, %v281_v48 }
 0x2c8   :  { %1340 = vmatpush3.msra.mxu0 %v1538_v4  ;;  %1347 = vmatprep.mubr.msk.f32.mxu0 %vm1474_vm1, %v1473_v3 }
 0x2c9   :  { %1341 = vmatprep.subr.mxu0 %v1473_v3 }
 0x2ca   :  { %1342 = vmatpush3.msra.mxu0 %v1550_v7 }
 0x2cb   :  { %1343 = vmatprep.subr.mxu0 %v1473_v3 }
 0x2cc   :  { %1344 = vmatpush3.msra.mxu0 %v1568_v10 }
 0x2cd   :  { %1345 = vmatprep.subr.mxu0 %v1473_v3 }
 0x2ce   :  { %1346 = vmatpush3.msra.mxu0 %v1578_v11 }
 0x2cf   :  { %1361 = vmatprep.subr.mxu0 %v1473_v3 }
 0x387   :  { %v350_v49 = vpop.f32.mrf.mxu0 }
 0x388   :  { %v354_v50 = vadd.f32 %v350_v49, %v143_v17 }
 0x389   :  { %v1338_v51 = vpop.f32.mrf.mxu0 }
 0x38a   :  { %1417 = vtanh.f32 %v354_v50  ;;  %v1201_v53 = vmul.f32 -1.442695, %v354_v50 }
 0x38c   :  { %1419 = vpow2.f32 %v1201_v53 }
 0x397   :  { %v1418_v52 = vpop.eup %1417 }
 0x398   :  { %364 = vrot.lane.b32.xlu0 %v1418_v52, %s1475_s3 }
 0x399   :  { %v1420_v54 = vpop.eup %1419 }
 0x39a   :  { %v358_v55 = vadd.f32 1.0, %v1420_v54 }
 0x39c   :  { %1421 = vrcp.f32 %v358_v55 }
 0x3a9   :  { %v1422_v56 = vpop.eup %1421 }
 0x3aa   :  { %v362_v59 = vmul.f32 %v1422_v56, %v272_v44 }
 0x40a   :  { %v365_v57 = vpop.permute.xlu0 %364 }
 0x40b   :  { %v367_v58 = vmul.f32 %v1422_v56, %v365_v57 }
 0x40d   :  { %369 = vrot.lane.b32.xlu1 %v367_v58, %s1476_s10 }
 0x47f   :  { %v370_v60 = vpop.permute.xlu1 %369 }
 0x480   :  { %v372_v61 = vadd.f32 %v370_v60, %v362_v59 }
 0x482   :  { %1423 = vtanh.f32 %v372_v61 }
 0x48f   :  { %v1424_v62 = vpop.eup %1423 }
 0x490   :  { %375 = vrot.lane.b32.xlu0 %v1424_v62, %s1475_s3 }
 0x502   :  { %v376_v63 = vpop.permute.xlu0 %375 }
 0x503   :  { %v378_v0 = vmul.f32 %v1422_v56, %v376_v63 }
 0x505   :  { %380 = vrot.lane.b32.xlu1 %v378_v0, %s1476_s10 }
 0x577   :  { %v381_v1 = vpop.permute.xlu1 %380 }
 0x578   :  { %1348 = vmatmul.mubr.msk.f32.vlgmr.msra.gmra.mxu0 %vm180_vm2, %v381_v1 }
 0x579   :  { %1362 = vmatpush3.msra.mxu0 %v1538_v4  ;;  %1369 = vmatprep.mubr.msk.f32.mxu0 %vm1474_vm1, %v1473_v3 }
 0x57a   :  { %1363 = vmatprep.subr.mxu0 %v1473_v3 }
 0x57b   :  { %1364 = vmatpush3.msra.mxu0 %v1550_v7 }
 0x57c   :  { %1365 = vmatprep.subr.mxu0 %v1473_v3 }
 0x57d   :  { %1366 = vmatpush3.msra.mxu0 %v1568_v10 }
 0x57e   :  { %1367 = vmatprep.subr.mxu0 %v1473_v3 }
 0x57f   :  { %1368 = vmatpush3.msra.mxu0 %v1578_v11 }
 0x580   :  { %1383 = vmatprep.subr.mxu0 %v1473_v3 }
 0x638   :  { %v450_v2 = vpop.f32.mrf.mxu0 }
 0x639   :  { %v454_v5 = vadd.f32 %v450_v2, %v1618_v22 }
 0x63a   :  { %v1349_v6 = vpop.f32.mrf.mxu0 }
 0x63b   :  { %1425 = vtanh.f32 %v454_v5  ;;  %v1203_v9 = vmul.f32 -1.442695, %v454_v5 }
 0x63d   :  { %1427 = vpow2.f32 %v1203_v9 }
 0x648   :  { %v1426_v8 = vpop.eup %1425 }
 0x649   :  { %464 = vrot.lane.b32.xlu0 %v1426_v8, %s1475_s3 }
 0x64a   :  { %v1428_v12 = vpop.eup %1427 }
 0x64b   :  { %v458_v13 = vadd.f32 1.0, %v1428_v12 }
 0x64d   :  { %1429 = vrcp.f32 %v458_v13 }
 0x65a   :  { %v1430_v14 = vpop.eup %1429 }
 0x65b   :  { %v462_v17 = vmul.f32 %v1430_v14, %v372_v61 }
 0x6bb   :  { %v465_v15 = vpop.permute.xlu0 %464 }
 0x6bc   :  { %v467_v16 = vmul.f32 %v1430_v14, %v465_v15 }
 0x6be   :  { %469 = vrot.lane.b32.xlu1 %v467_v16, %s1476_s10 }
 0x730   :  { %v470_v18 = vpop.permute.xlu1 %469 }
 0x731   :  { %v472_v19 = vadd.f32 %v470_v18, %v462_v17 }
 0x733   :  { %1431 = vtanh.f32 %v472_v19 }
 0x740   :  { %v1432_v21 = vpop.eup %1431 }
 0x741   :  { %475 = vrot.lane.b32.xlu0 %v1432_v21, %s1475_s3 }
 0x7b3   :  { %v476_v22 = vpop.permute.xlu0 %475 }
 0x7b4   :  { %v478_v23 = vmul.f32 %v1430_v14, %v476_v22 }
 0x7b6   :  { %480 = vrot.lane.b32.xlu1 %v478_v23, %s1476_s10 }
 0x828   :  { %v481_v25 = vpop.permute.xlu1 %480 }
 0x829   :  { %1359 = vmatmul.mubr.msk.f32.vlgmr.msra.gmra.mxu1 %vm180_vm2, %v481_v25 }
 0x82a   :  { %1373 = vmatpush3.msra.mxu1 %v1538_v4  ;;  %1380 = vmatprep.mubr.msk.f32.mxu1 %vm1474_vm1, %v1473_v3 }
 0x82b   :  { %1374 = vmatprep.subr.mxu1 %v1473_v3 }
 0x82c   :  { %1375 = vmatpush3.msra.mxu1 %v1550_v7 }
 0x82d   :  { %1376 = vmatprep.subr.mxu1 %v1473_v3 }
 0x82e   :  { %1377 = vmatpush3.msra.mxu1 %v1568_v10 }
 0x82f   :  { %1378 = vmatprep.subr.mxu1 %v1473_v3 }
 0x830   :  { %1379 = vmatpush3.msra.mxu1 %v1578_v11 }
 0x831   :  { %1394 = vmatprep.subr.mxu1 %v1473_v3 }
 0x8e9   :  { %v550_v27 = vpop.f32.mrf.mxu1 }
 0x8ea   :  { %v554_v29 = vadd.f32 %v550_v27, %v1616_v20 }
 0x8eb   :  { %v1360_v30 = vpop.f32.mrf.mxu1 }
 0x8ec   :  { %1433 = vtanh.f32 %v554_v29  ;;  %v1205_v33 = vmul.f32 -1.442695, %v554_v29 }
 0x8ee   :  { %1435 = vpow2.f32 %v1205_v33 }
 0x8f9   :  { %v1434_v32 = vpop.eup %1433 }
 0x8fa   :  { %564 = vrot.lane.b32.xlu0 %v1434_v32, %s1475_s3 }
 0x8fb   :  { %v1436_v34 = vpop.eup %1435 }
 0x8fc   :  { %v558_v35 = vadd.f32 1.0, %v1436_v34 }
 0x8fe   :  { %1437 = vrcp.f32 %v558_v35 }
 0x90b   :  { %v1438_v36 = vpop.eup %1437 }
 0x90c   :  { %v562_v39 = vmul.f32 %v1438_v36, %v472_v19 }
 0x96c   :  { %v565_v37 = vpop.permute.xlu0 %564 }
 0x96d   :  { %v567_v38 = vmul.f32 %v1438_v36, %v565_v37 }
 0x96f   :  { %569 = vrot.lane.b32.xlu1 %v567_v38, %s1476_s10 }
 0x9e1   :  { %v570_v40 = vpop.permute.xlu1 %569 }
 0x9e2   :  { %v572_v41 = vadd.f32 %v570_v40, %v562_v39 }
 0x9e4   :  { %1439 = vtanh.f32 %v572_v41 }
 0x9f1   :  { %v1440_v20 = vpop.eup %1439 }
 0x9f2   :  { %575 = vrot.lane.b32.xlu0 %v1440_v20, %s1475_s3 }
 0xa64   :  { %v576_v42 = vpop.permute.xlu0 %575 }
 0xa65   :  { %v578_v43 = vmul.f32 %v1438_v36, %v576_v42 }
 0xa67   :  { %580 = vrot.lane.b32.xlu1 %v578_v43, %s1476_s10 }
 0xad9   :  { %v581_v44 = vpop.permute.xlu1 %580 }
 0xada   :  { %1370 = vmatmul.mubr.msk.f32.vlgmr.msra.gmra.mxu0 %vm180_vm2, %v581_v44 }
 0xadb   :  { %1384 = vmatpush3.msra.mxu0 %v1538_v4  ;;  %1391 = vmatprep.mubr.msk.f32.mxu0 %vm1474_vm1, %v1473_v3 }
 0xadc   :  { %1385 = vmatprep.subr.mxu0 %v1473_v3 }
 0xadd   :  { %1386 = vmatpush3.msra.mxu0 %v1550_v7 }
 0xade   :  { %1387 = vmatprep.subr.mxu0 %v1473_v3 }
 0xadf   :  { %1388 = vmatpush3.msra.mxu0 %v1568_v10 }
 0xae0   :  { %1389 = vmatprep.subr.mxu0 %v1473_v3 }
 0xae1   :  { %1390 = vmatpush3.msra.mxu0 %v1578_v11 }
 0xb9a   :  { %v650_v45 = vpop.f32.mrf.mxu0 }
 0xb9b   :  { %v654_v46 = vadd.f32 %v650_v45, %v1622_v26 }
 0xb9c   :  { %v1371_v47 = vpop.f32.mrf.mxu0 }
 0xb9d   :  { %1441 = vtanh.f32 %v654_v46  ;;  %v1207_v49 = vmul.f32 -1.442695, %v654_v46  ;;  %v986_v46 = vld [vmem:[%s1856_s4 + $0x30] sm:$0xff]  ;;  %v985_v47 = vld [vmem:[%s1856_s4 + $0x28] sm:$0xff] }
 0xb9f   :  { %1443 = vpow2.f32 %v1207_v49  ;;  %v983_v49 = vld [vmem:[%s1856_s4 + $0x18] sm:$0xff] }
 0xbaa   :  { %v1442_v48 = vpop.eup %1441 }
 0xbab   :  { %664 = vrot.lane.b32.xlu0 %v1442_v48, %s1475_s3  ;;  %v984_v48 = vld [vmem:[%s1856_s4 + $0x20] sm:$0xff] }
 0xbac   :  { %v1444_v50 = vpop.eup %1443 }
 0xbad   :  { %v658_v51 = vadd.f32 1.0, %v1444_v50  ;;  %v982_v50 = vld [vmem:[%s1856_s4 + $0x10] sm:$0xff] }
 0xbaf   :  { %1445 = vrcp.f32 %v658_v51  ;;  %v981_v51 = vld [vmem:[%s1856_s4 + $0x8] sm:$0xff] }
 0xbbc   :  { %v1446_v52 = vpop.eup %1445 }
 0xbbd   :  { %v662_v55 = vmul.f32 %v1446_v52, %v572_v41 }
 0xc1d   :  { %v665_v53 = vpop.permute.xlu0 %664 }
 0xc1e   :  { %v667_v54 = vmul.f32 %v1446_v52, %v665_v53 }
 0xc20   :  { %669 = vrot.lane.b32.xlu1 %v667_v54, %s1476_s10  ;;  %v1107_v54 = vld [vmem:[%s1857_s6 + $0xf8] sm:$0xff] }
 0xc92   :  { %v670_v56 = vpop.permute.xlu1 %669 }
 0xc93   :  { %v672_v57 = vadd.f32 %v670_v56, %v662_v55  ;;  %v1091_v55 = vld [vmem:[%s1857_s6 + $0x78] sm:$0xff]  ;;  %v1106_v56 = vld [vmem:[%s1857_s6 + $0xf0] sm:$0xff] }
 0xc95   :  { %1447 = vtanh.f32 %v672_v57 }
 0xca2   :  { %v1448_v26 = vpop.eup %1447 }
 0xca3   :  { %675 = vrot.lane.b32.xlu0 %v1448_v26, %s1475_s3  ;;  %v1105_v26 = vld [vmem:[%s1857_s6 + $0xe8] sm:$0xff] }
 0xd15   :  { %v676_v58 = vpop.permute.xlu0 %675 }
 0xd16   :  { %v678_v59 = vmul.f32 %v1446_v52, %v676_v58  ;;  %v980_v52 = vld [vmem:[%s1856_s4] sm:$0xff]  ;;  %v1089_v58 = vld [vmem:[%s1857_s6 + $0x68] sm:$0xff] }
 0xd18   :  { %680 = vrot.lane.b32.xlu1 %v678_v59, %s1476_s10  ;;  %v1104_v59 = vld [vmem:[%s1857_s6 + $0xe0] sm:$0xff] }
 0xd8a   :  { %v681_v60 = vpop.permute.xlu1 %680 }
 0xd8b   :  { %1381 = vmatmul.mubr.msk.f32.vlgmr.msra.gmra.mxu1 %vm180_vm2, %v681_v60  ;;  %v1088_v60 = vld [vmem:[%s1857_s6 + $0x60] sm:$0xff] }
 0xd8c   :  { %1395 = vmatpush3.msra.mxu1 %v1538_v4  ;;  %1402 = vmatprep.mubr.msk.f32.mxu1 %vm1474_vm1, %v1473_v3 }
 0xd8d   :  { %1396 = vmatprep.subr.mxu1 %v1473_v3 }
 0xd8e   :  { %1397 = vmatpush3.msra.mxu1 %v1550_v7 }
 0xd8f   :  { %1398 = vmatprep.subr.mxu1 %v1473_v3 }
 0xd90   :  { %1399 = vmatpush3.msra.mxu1 %v1568_v10 }
 0xd91   :  { %1400 = vmatprep.subr.mxu1 %v1473_v3 }
 0xd92   :  { %1401 = vmatpush3.msra.mxu1 %v1578_v11 }
 0xd93   :  { %1266 = vmatprep.subr.mxu1 %v1107_v54 }
 0xe4b   :  { %v750_v61 = vpop.f32.mrf.mxu1 }
 0xe4c   :  { %v754_v62 = vadd.f32 %v750_v61, %v1620_v24  ;;  %v1103_v61 = vld [vmem:[%s1857_s6 + $0xd8] sm:$0xff] }
 0xe4d   :  { %v1382_v63 = vpop.f32.mrf.mxu1 }
 0xe4e   :  { %1449 = vtanh.f32 %v754_v62  ;;  %v1209_v0 = vmul.f32 -1.442695, %v754_v62  ;;  %v1087_v63 = vld [vmem:[%s1857_s6 + $0x58] sm:$0xff] }
 0xe50   :  { %1451 = vpow2.f32 %v1209_v0  ;;  %v1102_v0 = vld [vmem:[%s1857_s6 + $0xd0] sm:$0xff] }
 0xe5b   :  { %v1450_v4 = vpop.eup %1449 }
 0xe5c   :  { %764 = vrot.lane.b32.xlu0 %v1450_v4, %s1475_s3 }
 0xe5d   :  { %v1452_v1 = vpop.eup %1451 }
 0xe5e   :  { %v758_v7 = vadd.f32 1.0, %v1452_v1  ;;  %v1086_v1 = vld [vmem:[%s1857_s6 + $0x50] sm:$0xff] }
 0xe60   :  { %1453 = vrcp.f32 %v758_v7 }
 0xe6d   :  { %v1454_v2 = vpop.eup %1453 }
 0xe6e   :  { %v762_v6 = vmul.f32 %v1454_v2, %v672_v57  ;;  %v1090_v57 = vld [vmem:[%s1857_s6 + $0x70] sm:$0xff] }
 0xece   :  { %v765_v5 = vpop.permute.xlu0 %764 }
 0xecf   :  { %v767_v10 = vmul.f32 %v1454_v2, %v765_v5  ;;  %v1085_v5 = vld [vmem:[%s1857_s6 + $0x48] sm:$0xff] }
 0xed1   :  { %769 = vrot.lane.b32.xlu1 %v767_v10, %s1476_s10  ;;  %v1100_v10 = vld [vmem:[%s1857_s6 + $0xc0] sm:$0xff] }
 0xf43   :  { %v770_v11 = vpop.permute.xlu1 %769 }
 0xf44   :  { %v772_v8 = vadd.f32 %v770_v11, %v762_v6  ;;  %v1084_v6 = vld [vmem:[%s1857_s6 + $0x40] sm:$0xff]  ;;  %v1099_v11 = vld [vmem:[%s1857_s6 + $0xb8] sm:$0xff] }
 0xf46   :  { %1455 = vtanh.f32 %v772_v8 }
 0xf53   :  { %v1456_v24 = vpop.eup %1455 }
 0xf54   :  { %775 = vrot.lane.b32.xlu0 %v1456_v24, %s1475_s3  ;;  %v1098_v24 = vld [vmem:[%s1857_s6 + $0xb0] sm:$0xff] }
 0xfc6   :  { %v776_v9 = vpop.permute.xlu0 %775 }
 0xfc7   :  { %v778_v12 = vmul.f32 %v1454_v2, %v776_v9  ;;  %v1101_v2 = vld [vmem:[%s1857_s6 + $0xc8] sm:$0xff]  ;;  %v1082_v9 = vld [vmem:[%s1857_s6 + $0x30] sm:$0xff] }
 0xfc9   :  { %780 = vrot.lane.b32.xlu1 %v778_v12, %s1476_s10  ;;  %v1097_v12 = vld [vmem:[%s1857_s6 + $0xa8] sm:$0xff] }
0x103b   :  { %v781_v13 = vpop.permute.xlu1 %780 }
0x103c   :  { %1392 = vmatmul.mubr.msk.f32.vlgmr.msra.gmra.mxu0 %vm180_vm2, %v781_v13  ;;  %v1081_v13 = vld [vmem:[%s1857_s6 + $0x28] sm:$0xff] }
0x103d   :  { %1069 = vmatprep.mubr.f32.mxu0 %v1473_v3 }
0x10fc   :  { %v850_v14 = vpop.f32.mrf.mxu0 }
0x10fd   :  { %v854_v15 = vadd.f32 %v850_v14, %v1626_v31  ;;  %v1096_v14 = vld [vmem:[%s1857_s6 + $0xa0] sm:$0xff] }
0x10fe   :  { %v1393_v16 = vpop.f32.mrf.mxu0 }
0x10ff   :  { %1457 = vtanh.f32 %v854_v15  ;;  %v1211_v18 = vmul.f32 -1.442695, %v854_v15  ;;  %v1080_v15 = vld [vmem:[%s1857_s6 + $0x20] sm:$0xff]  ;;  %v1095_v16 = vld [vmem:[%s1857_s6 + $0x98] sm:$0xff] }
0x1101   :  { %1459 = vpow2.f32 %v1211_v18 }
0x110c   :  { %v1458_v17 = vpop.eup %1457 }
0x110d   :  { %864 = vrot.lane.b32.xlu0 %v1458_v17, %s1475_s3  ;;  %v1079_v17 = vld [vmem:[%s1857_s6 + $0x18] sm:$0xff] }
0x110e   :  { %v1460_v19 = vpop.eup %1459 }
0x110f   :  { %v858_v21 = vadd.f32 1.0, %v1460_v19  ;;  %v1094_v19 = vld [vmem:[%s1857_s6 + $0x90] sm:$0xff] }
0x1111   :  { %1461 = vrcp.f32 %v858_v21  ;;  %v1078_v21 = vld [vmem:[%s1857_s6 + $0x10] sm:$0xff] }
0x111e   :  { %v1462_v22 = vpop.eup %1461 }
0x111f   :  { %v862_v27 = vmul.f32 %v1462_v22, %v772_v8  ;;  %v1083_v8 = vld [vmem:[%s1857_s6 + $0x38] sm:$0xff] }
0x117f   :  { %v865_v23 = vpop.permute.xlu0 %864 }
0x1180   :  { %v867_v25 = vmul.f32 %v1462_v22, %v865_v23  ;;  %v1077_v23 = vld [vmem:[%s1857_s6 + $0x8] sm:$0xff] }
0x1182   :  { %869 = vrot.lane.b32.xlu1 %v867_v25, %s1476_s10  ;;  %v1092_v25 = vld [vmem:[%s1857_s6 + $0x80] sm:$0xff] }
0x11f4   :  { %v870_v3 = vpop.permute.xlu1 %869 }
0x11f5   :  { %v872_v29 = vadd.f32 %v870_v3, %v862_v27  ;;  %v1076_v27 = vld [vmem:[%s1857_s6] sm:$0xff]  ;;  %v990_v3 = vlaneseq }
0x11f7   :  { %1463 = vtanh.f32 %v872_v29 }
0x1204   :  { %v1464_v31 = vpop.eup %1463 }
0x1205   :  { %875 = vrot.lane.b32.xlu0 %v1464_v31, %s1475_s3 }
0x1277   :  { %v876_v30 = vpop.permute.xlu0 %875 }
0x1278   :  { %v878_v32 = vmul.f32 %v1462_v22, %v876_v30  ;;  %v1093_v22 = vld [vmem:[%s1857_s6 + $0x88] sm:$0xff] }
0x127a   :  { %880 = vrot.lane.b32.xlu1 %v878_v32, %s1476_s10  ;;  %v988_v32 = vld [vmem:[%s1858_s5] sm:$0x3] }
0x12ec   :  { %v881_v33 = vpop.permute.xlu1 %880 }
0x12ed   :  { %1403 = vmatmul.mubr.msk.f32.vlgmr.msra.gmra.mxu1 %vm180_vm2, %v881_v33 }
0x12ee   :  { %1267 = vmatpush3.msra.mxu1 %v1091_v55 }
0x12ef   :  { %1268 = vmatprep.subr.mxu1 %v1106_v56 }
0x12f0   :  { %1269 = vmatpush3.msra.mxu1 %v1090_v57 }
0x12f1   :  { %1270 = vmatprep.subr.mxu1 %v1105_v26 }
0x12f2   :  { %1271 = vmatpush3.msra.mxu1 %v1089_v58 }
0x12f3   :  { %1272 = vmatprep.subr.mxu1 %v1104_v59 }
0x12f4   :  { %1273 = vmatpush3.msra.mxu1 %v1088_v60 }
0x12f5   :  { %1274 = vmatprep.subr.mxu1 %v1103_v61 }
0x12f6   :  { %1275 = vmatpush3.msra.mxu1 %v1087_v63 }
0x12f7   :  { %1276 = vmatprep.subr.mxu1 %v1102_v0 }
0x12f8   :  { %1277 = vmatpush3.msra.mxu1 %v1086_v1 }
0x12f9   :  { %1278 = vmatprep.subr.mxu1 %v1101_v2 }
0x12fa   :  { %1279 = vmatpush3.msra.mxu1 %v1085_v5 }
0x12fb   :  { %1280 = vmatprep.subr.mxu1 %v1100_v10 }
0x12fc   :  { %1281 = vmatpush3.msra.mxu1 %v1084_v6 }
0x12fd   :  { %1282 = vmatprep.subr.mxu1 %v1099_v11 }
0x12fe   :  { %1283 = vmatpush3.msra.mxu1 %v1083_v8 }
0x12ff   :  { %1284 = vmatprep.subr.mxu1 %v1098_v24 }
0x1300   :  { %1285 = vmatpush3.msra.mxu1 %v1082_v9 }
0x1301   :  { %1286 = vmatprep.subr.mxu1 %v1097_v12 }
0x1302   :  { %1287 = vmatpush3.msra.mxu1 %v1081_v13 }
0x1303   :  { %1288 = vmatprep.subr.mxu1 %v1096_v14 }
0x1304   :  { %1289 = vmatpush3.msra.mxu1 %v1080_v15 }
0x1305   :  { %1290 = vmatprep.subr.mxu1 %v1095_v16 }
0x1306   :  { %1291 = vmatpush3.msra.mxu1 %v1079_v17 }
0x1307   :  { %1292 = vmatprep.subr.mxu1 %v1094_v19 }
0x1308   :  { %1293 = vmatpush3.msra.mxu1 %v1078_v21 }
0x1309   :  { %1294 = vmatprep.subr.mxu1 %v1093_v22 }
0x130a   :  { %1295 = vmatpush3.msra.mxu1 %v1077_v23 }
0x130b   :  { %1296 = vmatprep.subr.mxu1 %v1092_v25 }
0x130c   :  { %1297 = vmatpush3.msra.mxu1 %v1076_v27 }
0x13ad   :  { %v950_v34 = vpop.f32.mrf.mxu1 }
0x13ae   :  { %v954_v35 = vadd.f32 %v950_v34, %v1624_v28  ;;  %v987_v28 = vld [vmem:[%s1856_s4 + $0x38] sm:$0xff] }
0x13af   :  { %v1404_v36 = vpop.f32.mrf.mxu1  ;;  %1029 = vmatprep.subr.mxu0 %v987_v28 }
0x13b0   :  { %1465 = vtanh.f32 %v954_v35  ;;  %v1213_v38 = vmul.f32 -1.442695, %v954_v35  ;;  %1030 = vmatpush1.msra.mxu0 %v986_v46 }
0x13b1   :  { %1031 = vmatprep.subr.mxu0 %v985_v47 }
0x13b2   :  { %1467 = vpow2.f32 %v1213_v38  ;;  %1032 = vmatpush1.msra.mxu0 %v984_v48 }
0x13b3   :  { %1033 = vmatprep.subr.mxu0 %v983_v49 }
0x13b4   :  { %1034 = vmatpush1.msra.mxu0 %v982_v50 }
0x13b5   :  { %1035 = vmatprep.subr.mxu0 %v981_v51 }
0x13b6   :  { %1036 = vmatpush1.msra.mxu0 %v980_v52 }
0x13bd   :  { %v1466_v37 = vpop.eup %1465 }
0x13be   :  { %964 = vrot.lane.b32.xlu0 %v1466_v37, %s1475_s3 }
0x13bf   :  { %v1468_v39 = vpop.eup %1467 }
0x13c0   :  { %v958_v40 = vadd.f32 1.0, %v1468_v39 }
0x13c2   :  { %1469 = vrcp.f32 %v958_v40  ;;  %v1215_v40 = vld [vmem:[%s1859_s7] ss:$0 sm:$0xff] }
0x13cf   :  { %v1470_v41 = vpop.eup %1469 }
0x13d0   :  { %v962_v43 = vmul.f32 %v1470_v41, %v872_v29  ;;  %v991_v29 = vshrl.u32 %v990_v3, 7 }
0x13d2   :  { %v996_v31 = vsub.s32 1, %v991_v29  ;;  %v992_v30 = vsub.s32 0, %v991_v29 }
0x13d4   :  { %v997_v33 = vrot.slane %v988_v32, %v996_v31  ;;  %v993_v34 = vrot.slane %v988_v32, %v992_v30 }
0x1430   :  { %v965_v20 = vpop.permute.xlu0 %964 }
0x1431   :  { %v967_v42 = vmul.f32 %v1470_v41, %v965_v20 }
0x1433   :  { %969 = vrot.lane.b32.xlu1 %v967_v42, %s1476_s10 }
0x14a5   :  { %v970_v44 = vpop.permute.xlu1 %969 }
0x14a6   :  { %v972_v45 = vadd.f32 %v970_v44, %v962_v43 }
0x14a8   :  { %1471 = vtanh.f32 %v972_v45 }
0x14b5   :  { %v1472_v53 = vpop.eup %1471 }
0x14b6   :  { %975 = vrot.lane.b32.xlu0 %v1472_v53, %s1475_s3 }
0x1528   :  { %v976_v62 = vpop.permute.xlu0 %975 }
0x1529   :  { %v978_v4 = vmul.f32 %v1470_v41, %v976_v62 }
0x152b   :  { %v979_v7 = vmax.f32 %v978_v4, 0.0 }
0x152d   :  { %1001 = vrot.lane.b32.xlu1 %v979_v7, %s1476_s10 }
0x159f   :  { %v1002_v18 = vpop.permute.xlu1 %1001 }
0x15a0   :  { %1214 = vmatmul.mubr.msk.f32.vlgmr.msra.gmra.mxu0 %vm180_vm2, %v1002_v18 }
0x1660   :  { %v1071_v35 = vpop.f32.mrf.mxu0 }
0x1661   :  { %v1072_v38 = vadd.f32 %v1071_v35, %v993_v34 }
0x1662   :  { %v1073_v36 = vpop.f32.mrf.mxu0 }
0x1663   :  { %v1074_v37 = vadd.f32 %v1073_v36, %v997_v33 }
0x1665   :  { %1179 = vmatprep.mubr.f32.mxu1 %v1074_v37 }
0x1666   :  { %1180 = vmatmul.mubr.f32.vlgmr.msra.gmra.mxu1 %v1072_v38 }
0x1726   :  { %v1298_v39 = vpop.f32.mrf.mxu1 }
0x1728   :  { %v1299_v41 = vpop.f32.mrf.mxu1 }
0x1729   :  { %v1300_v20 = vadd.f32 %v1299_v41, %v1298_v39 }
0x172b   :  { %v1182_v42 = vadd.f32 %v1300_v20, %v1215_v40 }
0x172d   :  { %1185 = vst [vmem:[%s1860_s8] sm:$0xff] %v1182_v42 }

</bundles_post_ra>
